<compile_context>
chip_gen: v6e
topology: v6e:2x2x1
jax: 0.10.0
libtpu: 0.0.40
codegen_flags: <defaults>
</compile_context>

<pallas_src>
import jax
import jax.numpy as jnp
from jax.experimental import pallas as pl
from jax.experimental.pallas import tpu as pltpu


def feedforward_kernel(x_ref, gamma_ref, beta_ref, w1_ref, b1_ref, w2_ref, b2_ref,
                       o_ref, y_scr, acc_scr):
    # Grid: (row tiles, hidden tiles).  Output / scratch block index is constant
    # along axis 1, so y_scr / acc_scr / o_ref stay resident across the H sweep.
    j = pl.program_id(1)

    @pl.when(j == 0)
    def _init():
        # ---- LayerNorm over the last dim (eps=1e-5, affine), stats in f32 ----
        x = x_ref[...].astype(jnp.float32)
        mean = jnp.mean(x, axis=-1, keepdims=True)
        xc = x - mean
        var = jnp.mean(xc * xc, axis=-1, keepdims=True)
        inv = jax.lax.rsqrt(var + 1e-5)
        y_scr[...] = (xc * inv * gamma_ref[...].astype(jnp.float32)
                      + beta_ref[...].astype(jnp.float32))
        acc_scr[...] = jnp.zeros_like(acc_scr)

    # ---- MLP slice over this H tile: (TM,E)@(E,TH) -> ReLU -> (TM,TH)@(TH,E) ----
    w1 = w1_ref[...]
    w2 = w2_ref[...]
    h = jnp.dot(y_scr[...].astype(w1.dtype), w1, preferred_element_type=jnp.float32)
    # Fused bias + ReLU + downcast: only the narrow copy feeding the second MXU
    # pass stays live, the f32 (TM, TH) intermediate dies here.
    h = jnp.maximum(h + b1_ref[...].astype(jnp.float32), 0.0).astype(w2.dtype)
    acc_scr[...] += jnp.dot(h, w2, preferred_element_type=jnp.float32)

    @pl.when(j == pl.num_programs(1) - 1)
    def _finalize():
        z = acc_scr[...] + b2_ref[...].astype(jnp.float32)
        # Residual is added to the *normalized* activation, matching the PyTorch
        # forward which rebinds x = LayerNorm(x) before the MLP.
        o_ref[...] = (y_scr[...] + z).astype(o_ref.dtype)


def _round_up(v, m):
    return ((v + m - 1) // m) * m


def feedforward(x, gamma, beta, w1, b1, w2, b2, *,
                tile_rows=None, tile_h=None, vmem_limit_bytes=None):
    """x: (batch, seq, E). Weights stored (in, out): w1 (E,H), w2 (H,E)."""
    B, S, E = x.shape
    Ew, H = w1.shape
    assert Ew == E and w2.shape == (H, E) and b1.shape == (H,) and b2.shape == (E,)
    N = B * S
    x2 = x.reshape(N, E)                      # contiguous reshape, no copy

    isz = lambda a: jnp.dtype(a.dtype).itemsize
    w_isz = max(isz(w1), isz(w2))

    # ---- VMEM budget: physical capacity minus headroom for Mosaic scratch ----
    try:
        vmem_cap = pltpu.get_tpu_info().vmem_capacity_bytes
    except Exception:
        vmem_cap = 64 << 20                   # conservative: v7x per-TensorCore
    budget = max(vmem_cap - (8 << 20), 16 << 20)

    def need_bytes(tm, th):
        wbuf = 1 if th == H else 2            # weights single-buffered only when resident
        x_tile = tm * E * isz(x)
        o_tile = tm * E * isz(x)
        io = 2 * (x_tile + o_tile)            # double-buffered streaming tiles
        wts = wbuf * (E * th * isz(w1) + th * E * isz(w2) + th * isz(b1))
        vecs = E * (isz(gamma) + isz(beta) + isz(b2))          # single-buffered
        scr = 2 * tm * E * 4                  # y_scr + acc_scr (f32)
        interm = tm * th * 4 + tm * (E + th) * w_isz           # f32 h + dot-operand casts
        return io + wts + vecs + scr + interm + (2 << 20)

    # ---- hidden tile: fully-resident weights when they fit, else H-reduction ----
    if tile_h is None:
        tile_h = H
        if need_bytes(8, H) > budget:
            for cand in range(_round_up(H, 128), 0, -128):
                if H % cand == 0 and need_bytes(8, cand) <= budget:
                    tile_h = cand
                    break
    tile_h = min(int(tile_h), H)
    assert H % tile_h == 0, "tile_h must divide H (ragged H tiles would read garbage)"
    num_h = H // tile_h

    # ---- row tile: largest candidate (<= padded N) that fits the budget ----
    if tile_rows is None:
        n_cap = _round_up(N, 8)
        cands = [c for c in (512, 256, 128, 64, 32, 16, 8) if c <= n_cap] or [8]
        tile_rows = cands[-1]
        for cand in cands:
            if need_bytes(cand, tile_h) <= budget:
                tile_rows = cand
                break
    else:
        tile_rows = max(8, (min(int(tile_rows), _round_up(N, 8)) // 8) * 8)

    grid = (pl.cdiv(N, tile_rows), num_h)     # ragged last row block -> masked stores

    if vmem_limit_bytes is None:
        vmem_limit_bytes = int(min(max(need_bytes(tile_rows, tile_h) + (4 << 20),
                                       16 << 20), budget))

    # Constant-index operands never change block index -> single buffer.
    const_mode = pl.Buffered(1)
    w_mode = pl.Buffered(1) if num_h == 1 else pl.Buffered(2)

    in_specs = [
        pl.BlockSpec((tile_rows, E), lambda i, j: (i, 0)),                           # x tile
        pl.BlockSpec((1, E), lambda i, j: (0, 0), pipeline_mode=const_mode),         # gamma
        pl.BlockSpec((1, E), lambda i, j: (0, 0), pipeline_mode=const_mode),         # beta
        pl.BlockSpec((E, tile_h), lambda i, j: (0, j), pipeline_mode=w_mode),        # w1
        pl.BlockSpec((1, tile_h), lambda i, j: (0, j), pipeline_mode=w_mode),        # b1
        pl.BlockSpec((tile_h, E), lambda i, j: (j, 0), pipeline_mode=w_mode),        # w2
        pl.BlockSpec((1, E), lambda i, j: (0, 0), pipeline_mode=const_mode),         # b2
    ]
    out_spec = pl.BlockSpec((tile_rows, E), lambda i, j: (i, 0))

    flops = 4 * N * E * H + 10 * N * E
    bytes_accessed = (2 * N * E * isz(x)
                      + E * H * isz(w1) + H * E * isz(w2)
                      + H * isz(b1) + E * (isz(gamma) + isz(beta) + isz(b2)))
    cost = pl.CostEstimate(flops=int(flops), transcendentals=int(N),
                           bytes_accessed=int(bytes_accessed))

    out = pl.pallas_call(
        feedforward_kernel,
        out_shape=jax.ShapeDtypeStruct((N, E), x.dtype),
        grid_spec=pl.GridSpec(
            grid=grid,
            in_specs=in_specs,
            out_specs=out_spec,
            scratch_shapes=[pltpu.VMEM((tile_rows, E), jnp.float32),   # y (normalized x)
                            pltpu.VMEM((tile_rows, E), jnp.float32)],  # MLP accumulator
        ),
        compiler_params=pltpu.CompilerParams(
            dimension_semantics=("parallel", "arbitrary"),
            vmem_limit_bytes=vmem_limit_bytes),
        cost_estimate=cost,
    )(x2, gamma.reshape(1, E), beta.reshape(1, E),
      w1, b1.reshape(1, H), w2, b2.reshape(1, E))

    return out.reshape(B, S, E)


def reference(x, gamma, beta, w1, b1, w2, b2):
    xf = x.astype(jnp.float32)
    mean = jnp.mean(xf, axis=-1, keepdims=True)
    var = jnp.mean((xf - mean) ** 2, axis=-1, keepdims=True)
    y = (xf - mean) * jax.lax.rsqrt(var + 1e-5) * gamma + beta
    h = jnp.maximum(y @ w1 + b1, 0.0)
    z = h @ w2 + b2
    return (y + z).astype(x.dtype)


if __name__ == "__main__":
    embedding_dim = 32
    factor = 4
    hidden = factor * embedding_dim  # 128
    B, S = 2, 8

    key = jax.random.PRNGKey(0)
    kx, kw1, kb1, kw2, kb2 = jax.random.split(key, 5)

    x = jax.random.normal(kx, (B, S, embedding_dim), dtype=jnp.float32)

    # LayerNorm affine params (PyTorch default init: ones / zeros)
    gamma = jnp.ones((embedding_dim,), jnp.float32)
    beta = jnp.zeros((embedding_dim,), jnp.float32)

    # Linear params, stored (in, out) for the kernel (PyTorch stores (out, in);
    # the one-time transpose happens here in plain JAX).
    lim1 = 1.0 / jnp.sqrt(embedding_dim)
    w1 = jax.random.uniform(kw1, (embedding_dim, hidden), jnp.float32, -lim1, lim1)
    b1 = jax.random.uniform(kb1, (hidden,), jnp.float32, -lim1, lim1)
    lim2 = 1.0 / jnp.sqrt(hidden)
    w2 = jax.random.uniform(kw2, (hidden, embedding_dim), jnp.float32, -lim2, lim2)
    b2 = jax.random.uniform(kb2, (embedding_dim,), jnp.float32, -lim2, lim2)

    out = feedforward(x, gamma, beta, w1, b1, w2, b2)
    out = jax.block_until_ready(out)

    ref = reference(x, gamma, beta, w1, b1, w2, b2)
    assert out.shape == (B, S, embedding_dim)
    assert jnp.allclose(out, ref, atol=1e-4, rtol=1e-4)

    print("KERNEL_OK")
</pallas_src>

<mosaic_0001>
module attributes {stable_mosaic.version = 11 : i64} {
  func.func @feedforward_kernel(%arg0: i32, %arg1: i32, %arg2: memref<16x32xf32, #tpu.memory_space<vmem>>, %arg3: memref<1x32xf32, #tpu.memory_space<vmem>>, %arg4: memref<1x32xf32, #tpu.memory_space<vmem>>, %arg5: memref<32x128xf32, #tpu.memory_space<vmem>>, %arg6: memref<1x128xf32, #tpu.memory_space<vmem>>, %arg7: memref<128x32xf32, #tpu.memory_space<vmem>>, %arg8: memref<1x32xf32, #tpu.memory_space<vmem>>, %arg9: memref<16x32xf32, #tpu.memory_space<vmem>>, %arg10: memref<16x32xf32, #tpu.memory_space<vmem>>, %arg11: memref<16x32xf32, #tpu.memory_space<vmem>>) attributes {dimension_semantics = [#tpu.dimension_semantics<parallel>, #tpu.dimension_semantics<arbitrary>], iteration_bounds = array<i64: 1, 1>, scalar_prefetch = 0 : i64, scratch_operands = 2 : i64, tpu.core_type = #tpu.core_type<tc>, window_params = [{transform_indices = @transform_0, window_bounds = array<i64: 16, 32>}, {pipeline_mode = #tpu.pipeline_mode<synchronous>, transform_indices = @transform_1, window_bounds = array<i64: 1, 32>}, {pipeline_mode = #tpu.pipeline_mode<synchronous>, transform_indices = @transform_2, window_bounds = array<i64: 1, 32>}, {pipeline_mode = #tpu.pipeline_mode<synchronous>, transform_indices = @transform_3, window_bounds = array<i64: 32, 128>}, {pipeline_mode = #tpu.pipeline_mode<synchronous>, transform_indices = @transform_4, window_bounds = array<i64: 1, 128>}, {pipeline_mode = #tpu.pipeline_mode<synchronous>, transform_indices = @transform_5, window_bounds = array<i64: 128, 32>}, {pipeline_mode = #tpu.pipeline_mode<synchronous>, transform_indices = @transform_6, window_bounds = array<i64: 1, 32>}, {transform_indices = @transform_7, window_bounds = array<i64: 16, 32>}]} {
    %c0_i32 = arith.constant 0 : i32
    %0 = arith.cmpi eq, %arg1, %c0_i32 : i32
    %1 = arith.extui %0 : i1 to i32
    %c0_i32_0 = arith.constant 0 : i32
    %2 = arith.cmpi ne, %1, %c0_i32_0 : i32
    scf.if %2 {
      %c0_16 = arith.constant 0 : index
      %c0_17 = arith.constant 0 : index
      %19 = vector.load %arg2[%c0_16, %c0_17] : memref<16x32xf32, #tpu.memory_space<vmem>>, vector<16x32xf32>
      %cst_18 = arith.constant dense<0.000000e+00> : vector<16xf32>
      %20 = vector.multi_reduction <add>, %19, %cst_18 [1] : vector<16x32xf32> to vector<16xf32>
      %21 = vector.shape_cast %20 : vector<16xf32> to vector<16x1xf32>
      %cst_19 = arith.constant 3.200000e+01 : f32
      %22 = vector.broadcast %cst_19 : f32 to vector<16x1xf32>
      %23 = arith.divf %21, %22 : vector<16x1xf32>
      %24 = vector.broadcast %23 : vector<16x1xf32> to vector<16x32xf32>
      %25 = arith.subf %19, %24 : vector<16x32xf32>
      %26 = arith.mulf %25, %25 : vector<16x32xf32>
      %cst_20 = arith.constant dense<0.000000e+00> : vector<16xf32>
      %27 = vector.multi_reduction <add>, %26, %cst_20 [1] : vector<16x32xf32> to vector<16xf32>
      %28 = vector.shape_cast %27 : vector<16xf32> to vector<16x1xf32>
      %cst_21 = arith.constant 3.200000e+01 : f32
      %29 = vector.broadcast %cst_21 : f32 to vector<16x1xf32>
      %30 = arith.divf %28, %29 : vector<16x1xf32>
      %cst_22 = arith.constant 9.99999974E-6 : f32
      %31 = vector.broadcast %cst_22 : f32 to vector<16x1xf32>
      %32 = arith.addf %30, %31 : vector<16x1xf32>
      %33 = math.rsqrt %32 : vector<16x1xf32>
      %34 = vector.broadcast %33 : vector<16x1xf32> to vector<16x32xf32>
      %35 = arith.mulf %25, %34 : vector<16x32xf32>
      %c0_23 = arith.constant 0 : index
      %c0_24 = arith.constant 0 : index
      %36 = vector.load %arg3[%c0_23, %c0_24] : memref<1x32xf32, #tpu.memory_space<vmem>>, vector<1x32xf32>
      %37 = vector.broadcast %36 : vector<1x32xf32> to vector<16x32xf32>
      %38 = arith.mulf %35, %37 : vector<16x32xf32>
      %c0_25 = arith.constant 0 : index
      %c0_26 = arith.constant 0 : index
      %39 = vector.load %arg4[%c0_25, %c0_26] : memref<1x32xf32, #tpu.memory_space<vmem>>, vector<1x32xf32>
      %40 = vector.broadcast %39 : vector<1x32xf32> to vector<16x32xf32>
      %41 = arith.addf %38, %40 : vector<16x32xf32>
      %c0_27 = arith.constant 0 : index
      %c0_28 = arith.constant 0 : index
      %42 = vector.load %arg10[%c0_27, %c0_28] : memref<16x32xf32, #tpu.memory_space<vmem>>, vector<16x32xf32>
      tpu.vector_store %arg10[%c0_27, %c0_28], %41 {strides = array<i32>} : memref<16x32xf32, #tpu.memory_space<vmem>>, vector<16x32xf32>,
      %cst_29 = arith.constant 0.000000e+00 : f32
      %43 = vector.broadcast %cst_29 : f32 to vector<16x32xf32>
      %c0_30 = arith.constant 0 : index
      %c0_31 = arith.constant 0 : index
      %44 = vector.load %arg11[%c0_30, %c0_31] : memref<16x32xf32, #tpu.memory_space<vmem>>, vector<16x32xf32>
      tpu.vector_store %arg11[%c0_30, %c0_31], %43 {strides = array<i32>} : memref<16x32xf32, #tpu.memory_space<vmem>>, vector<16x32xf32>,
    } else {
    }
    %c0 = arith.constant 0 : index
    %c0_1 = arith.constant 0 : index
    %3 = vector.load %arg5[%c0, %c0_1] : memref<32x128xf32, #tpu.memory_space<vmem>>, vector<32x128xf32>
    %c0_2 = arith.constant 0 : index
    %c0_3 = arith.constant 0 : index
    %4 = vector.load %arg7[%c0_2, %c0_3] : memref<128x32xf32, #tpu.memory_space<vmem>>, vector<128x32xf32>
    %c0_4 = arith.constant 0 : index
    %c0_5 = arith.constant 0 : index
    %5 = vector.load %arg10[%c0_4, %c0_5] : memref<16x32xf32, #tpu.memory_space<vmem>>, vector<16x32xf32>
    %cst = arith.constant dense<0.000000e+00> : vector<16x128xf32>
    %6 = tpu.matmul %5, %3, %cst {dimension_numbers = #tpu.dot_dimension_numbers<[1], [0], [0], [1], [0, 0, 1, 1], [], []>} : vector<16x32xf32>, vector<32x128xf32>, vector<16x128xf32> -> vector<16x128xf32>
    %c0_6 = arith.constant 0 : index
    %c0_7 = arith.constant 0 : index
    %7 = vector.load %arg6[%c0_6, %c0_7] : memref<1x128xf32, #tpu.memory_space<vmem>>, vector<1x128xf32>
    %8 = vector.broadcast %7 : vector<1x128xf32> to vector<16x128xf32>
    %9 = arith.addf %6, %8 : vector<16x128xf32>
    %cst_8 = arith.constant 0.000000e+00 : f32
    %10 = vector.broadcast %cst_8 : f32 to vector<16x128xf32>
    %11 = arith.maximumf %9, %10 : vector<16x128xf32>
    %c0_9 = arith.constant 0 : index
    %c0_10 = arith.constant 0 : index
    %12 = vector.load %arg11[%c0_9, %c0_10] : memref<16x32xf32, #tpu.memory_space<vmem>>, vector<16x32xf32>
    %cst_11 = arith.constant dense<0.000000e+00> : vector<16x32xf32>
    %13 = tpu.matmul %11, %4, %cst_11 {dimension_numbers = #tpu.dot_dimension_numbers<[1], [0], [0], [1], [0, 0, 1, 1], [], []>} : vector<16x128xf32>, vector<128x32xf32>, vector<16x32xf32> -> vector<16x32xf32>
    %14 = arith.addf %12, %13 : vector<16x32xf32>
    %c0_12 = arith.constant 0 : index
    %c0_13 = arith.constant 0 : index
    %15 = vector.load %arg11[%c0_12, %c0_13] : memref<16x32xf32, #tpu.memory_space<vmem>>, vector<16x32xf32>
    tpu.vector_store %arg11[%c0_12, %c0_13], %14 {strides = array<i32>} : memref<16x32xf32, #tpu.memory_space<vmem>>, vector<16x32xf32>,
    %c0_i32_14 = arith.constant 0 : i32
    %16 = arith.cmpi eq, %arg1, %c0_i32_14 : i32
    %17 = arith.extui %16 : i1 to i32
    %c0_i32_15 = arith.constant 0 : i32
    %18 = arith.cmpi ne, %17, %c0_i32_15 : i32
    scf.if %18 {
      %c0_16 = arith.constant 0 : index
      %c0_17 = arith.constant 0 : index
      %19 = vector.load %arg11[%c0_16, %c0_17] : memref<16x32xf32, #tpu.memory_space<vmem>>, vector<16x32xf32>
      %c0_18 = arith.constant 0 : index
      %c0_19 = arith.constant 0 : index
      %20 = vector.load %arg8[%c0_18, %c0_19] : memref<1x32xf32, #tpu.memory_space<vmem>>, vector<1x32xf32>
      %21 = vector.broadcast %20 : vector<1x32xf32> to vector<16x32xf32>
      %22 = arith.addf %19, %21 : vector<16x32xf32>
      %c0_20 = arith.constant 0 : index
      %c0_21 = arith.constant 0 : index
      %23 = vector.load %arg10[%c0_20, %c0_21] : memref<16x32xf32, #tpu.memory_space<vmem>>, vector<16x32xf32>
      %24 = arith.addf %23, %22 : vector<16x32xf32>
      %c0_22 = arith.constant 0 : index
      %c0_23 = arith.constant 0 : index
      %25 = vector.load %arg9[%c0_22, %c0_23] : memref<16x32xf32, #tpu.memory_space<vmem>>, vector<16x32xf32>
      tpu.vector_store %arg9[%c0_22, %c0_23], %24 {strides = array<i32>} : memref<16x32xf32, #tpu.memory_space<vmem>>, vector<16x32xf32>,
    } else {
    }
    return
  }
  func.func @transform_0(%arg0: i32, %arg1: i32) -> (i32, i32) {
    %c0_i32 = arith.constant 0 : i32
    %c0_i32_0 = arith.constant 0 : i32
    return %arg0, %c0_i32 : i32, i32
  }
  func.func @transform_1(%arg0: i32, %arg1: i32) -> (i32, i32) {
    %c0_i32 = arith.constant 0 : i32
    %c0_i32_0 = arith.constant 0 : i32
    %c0_i32_1 = arith.constant 0 : i32
    return %c0_i32, %c0_i32_0 : i32, i32
  }
  func.func @transform_2(%arg0: i32, %arg1: i32) -> (i32, i32) {
    %c0_i32 = arith.constant 0 : i32
    %c0_i32_0 = arith.constant 0 : i32
    %c0_i32_1 = arith.constant 0 : i32
    return %c0_i32, %c0_i32_0 : i32, i32
  }
  func.func @transform_3(%arg0: i32, %arg1: i32) -> (i32, i32) {
    %c0_i32 = arith.constant 0 : i32
    %c0_i32_0 = arith.constant 0 : i32
    return %c0_i32, %arg1 : i32, i32
  }
  func.func @transform_4(%arg0: i32, %arg1: i32) -> (i32, i32) {
    %c0_i32 = arith.constant 0 : i32
    %c0_i32_0 = arith.constant 0 : i32
    return %c0_i32, %arg1 : i32, i32
  }
  func.func @transform_5(%arg0: i32, %arg1: i32) -> (i32, i32) {
    %c0_i32 = arith.constant 0 : i32
    %c0_i32_0 = arith.constant 0 : i32
    return %arg1, %c0_i32 : i32, i32
  }
  func.func @transform_6(%arg0: i32, %arg1: i32) -> (i32, i32) {
    %c0_i32 = arith.constant 0 : i32
    %c0_i32_0 = arith.constant 0 : i32
    %c0_i32_1 = arith.constant 0 : i32
    return %c0_i32, %c0_i32_0 : i32, i32
  }
  func.func @transform_7(%arg0: i32, %arg1: i32) -> (i32, i32) {
    %c0_i32 = arith.constant 0 : i32
    %c0_i32_0 = arith.constant 0 : i32
    return %arg0, %c0_i32 : i32, i32
  }
}

</mosaic_0001>

<bundles_post_ra>
// kernel: tpu_custom_call.1
= control target key start
LH: loop header
LB: loop body
LE: loop exit
PB: predicated region body
PF: predicated region fallthrough
CT: control target
= control target key end

     0   :  { %vm33_vm0 = vcmask 261120   ;;  %s568_s0 = inlined_call_operand.vmem [shape: f32[16,32], index: 0, kind: input, shape index: {}]   ;;  %s569_s1 = inlined_call_operand.vmem [shape: f32[1,32], index: 1, kind: input, shape index: {}]   ;;  %s570_s2 = inlined_call_operand.vmem [shape: f32[1,32], index: 2, kind: input, shape index: {}]   ;;  %s571_s3 = inlined_call_operand.vmem [shape: f32[32,128], index: 3, kind: input, shape index: {}]   ;;  %s572_s4 = inlined_call_operand.vmem [shape: f32[1,128], index: 4, kind: input, shape index: {}]   ;;  %s573_s5 = inlined_call_operand.vmem [shape: f32[128,32], index: 5, kind: input, shape index: {}]   ;;  %s574_s6 = inlined_call_operand.vmem [shape: f32[1,32], index: 6, kind: input, shape index: {}]   ;;  %s575_s7 = inlined_call_operand.hbm [shape: f32[16,32], index: 7, kind: output, shape index: {}]  }
   0x1   :  { %v31_v0 = vld [vmem:[%s568_s0] sm:$0xff]  ;;  %v32_v1 = vld [vmem:[%s568_s0 + $0x8] sm:$0xff] }
   0x2   :  { %12 = vsyncpa [#allocation5], 0  ;;  %v34_v2 = vsel %vm33_vm0, %v31_v0, 0.0  ;;  %v37_v3 = vsel %vm33_vm0, %v32_v1, 0.0  ;;  %v86_v14 = vld [vmem:[%s571_s3 + $0x18] sm:$0xff]  ;;  %v85_v15 = vld [vmem:[%s571_s3 + $0x10] sm:$0xff] }
   0x3   :  { %35 = vadd.xlane.f32.xlu0 %v34_v2  ;;  %343 = vmatprep.subr.mxu0 %v86_v14  ;;  %v84_v16 = vld [vmem:[%s571_s3 + $0x8] sm:$0xff]  ;;  %v83_v17 = vld [vmem:[%s571_s3] sm:$0xff]  ;;  %v102_v18 = vld [vmem:[%s573_s5 + $0x78] sm:$0xff]  ;;  %v419_v52 = vmov 0.0   ;;  %s420_s22 = smov [#allocation4]  }
   0x4   :  { %344 = vmatpush3.msra.mxu0 %v86_v14  ;;  %v101_v19 = vld [vmem:[%s573_s5 + $0x70] sm:$0xff]  ;;  %354 = vmatprep.subr.mxu1 %v102_v18  ;;  %v100_v20 = vld [vmem:[%s573_s5 + $0x68] sm:$0xff]  ;;  %v99_v21 = vld [vmem:[%s573_s5 + $0x60] sm:$0xff]  ;;  %82 = vst.msk [vmem:[#allocation3 + $0x8] sm:$0xff] %vm33_vm0, %v419_v52  ;;  %s302_s23 = sshll.u32 %s420_s22, 4  ;;  %s303_s23 = int_to_ptr.vmem [resolvable:$true] %s302_s23 }
   0x5   :  { %345 = vmatprep.subr.mxu0 %v85_v15  ;;  %355 = vmatpush3.msra.mxu1 %v102_v18  ;;  %v98_v22 = vld [vmem:[%s573_s5 + $0x58] sm:$0xff]  ;;  %v97_v23 = vld [vmem:[%s573_s5 + $0x50] sm:$0xff]  ;;  %v96_v24 = vld [vmem:[%s573_s5 + $0x48] sm:$0xff]  ;;  %81 = vst.msk [vmem:[#allocation3] sm:$0xff] %vm33_vm0, %v419_v52  ;;  %s397_s24 = scalar_lea.vmem %s303_s23, 256  ;;  %p402_p1 = scmp.lt.s32.totalorder %s303_s23, %s303_s23 }
   0x6   :  { %346 = vmatpush3.msra.mxu0 %v85_v15  ;;  %356 = vmatprep.subr.mxu1 %v101_v19  ;;  %v95_v25 = vld [vmem:[%s573_s5 + $0x40] sm:$0xff]  ;;  %v94_v26 = vld [vmem:[%s573_s5 + $0x38] sm:$0xff]  ;;  %v93_v27 = vld [vmem:[%s573_s5 + $0x30] sm:$0xff]  ;;  %p398_p0 = scmp.ne.s32.totalorder %s303_s23, %s397_s24  ;;  %p403_p2 = scmp.lt.s32.totalorder %s397_s24, %s397_s24 }
   0x7   :  { %38 = vadd.xlane.f32.xlu0 %v37_v3  ;;  %347 = vmatprep.subr.mxu0 %v84_v16  ;;  %v92_v28 = vld [vmem:[%s573_s5 + $0x28] sm:$0xff]  ;;  %v91_v29 = vld [vmem:[%s573_s5 + $0x20] sm:$0xff]  ;;  %v90_v48 = vld [vmem:[%s573_s5 + $0x18] sm:$0xff] }
   0x8   :  { %348 = vmatpush3.msra.mxu0 %v84_v16  ;;  %357 = vmatpush3.msra.mxu1 %v101_v19  ;;  %v313_v37 = vld [vmem:[%s569_s1] ss:$0 sm:$0xff]  ;;  %v89_v49 = vld [vmem:[%s573_s5 + $0x10] sm:$0xff]  ;;  %v88_v50 = vld [vmem:[%s573_s5 + $0x8] sm:$0xff]  ;;  %p404_p3 = por %p403_p2, %p402_p1 }
   0x9   :  { %349 = vmatprep.subr.mxu0 %v83_v17  ;;  %358 = vmatprep.subr.mxu1 %v100_v20  ;;  %v314_v39 = vld [vmem:[%s570_s2] ss:$0 sm:$0xff] }
   0xa   :  { %350 = vmatpush3.msra.mxu0 %v83_v17  ;;  %359 = vmatpush3.msra.mxu1 %v100_v20  ;;  %v87_v51 = vld [vmem:[%s573_s5] sm:$0xff]  ;;  %p405_p4 = pnand %p404_p3, %p398_p0 }
   0xb   :  { %360 = vmatprep.subr.mxu1 %v99_v21  ;;  %v315_v53 = vld [vmem:[%s572_s4] ss:$0 sm:$0xff]  ;;  %v197_v60 = vld [vmem:[#allocation3 + $0x8] sm:$0xff] }
   0xc   :  { %361 = vmatpush3.msra.mxu1 %v99_v21  ;;  %v196_v62 = vld [vmem:[#allocation3] sm:$0xff]  ;;  %v318_v2 = vld [vmem:[%s574_s6] ss:$0 sm:$0xff] }
   0xd   :  { %362 = vmatprep.subr.mxu1 %v98_v22 }
   0xe   :  { %363 = vmatpush3.msra.mxu1 %v98_v22 }
   0xf   :  { %364 = vmatprep.subr.mxu1 %v97_v23 }
  0x10   :  { %365 = vmatpush3.msra.mxu1 %v97_v23 }
  0x11   :  { %366 = vmatprep.subr.mxu1 %v96_v24 }
  0x12   :  { %367 = vmatpush3.msra.mxu1 %v96_v24 }
  0x13   :  { %368 = vmatprep.subr.mxu1 %v95_v25 }
  0x14   :  { %369 = vmatpush3.msra.mxu1 %v95_v25 }
  0x15   :  { %370 = vmatprep.subr.mxu1 %v94_v26 }
  0x16   :  { %371 = vmatpush3.msra.mxu1 %v94_v26 }
  0x17   :  { %372 = vmatprep.subr.mxu1 %v93_v27 }
  0x18   :  { %373 = vmatpush3.msra.mxu1 %v93_v27 }
  0x19   :  { %374 = vmatprep.subr.mxu1 %v92_v28 }
  0x1a   :  { %375 = vmatpush3.msra.mxu1 %v92_v28 }
  0x1b   :  { %376 = vmatprep.subr.mxu1 %v91_v29 }
  0x1c   :  { %377 = vmatpush3.msra.mxu1 %v91_v29 }
  0x1d   :  { %378 = vmatprep.subr.mxu1 %v90_v48 }
  0x1e   :  { %379 = vmatpush3.msra.mxu1 %v90_v48 }
  0x1f   :  { %380 = vmatprep.subr.mxu1 %v89_v49 }
  0x20   :  { %381 = vmatpush3.msra.mxu1 %v89_v49 }
  0x21   :  { %382 = vmatprep.subr.mxu1 %v88_v50 }
  0x22   :  { %383 = vmatpush3.msra.mxu1 %v88_v50 }
  0x23   :  { %384 = vmatprep.subr.mxu1 %v87_v51 }
  0x24   :  { %385 = vmatpush3.msra.mxu1 %v87_v51 }
  0x8c   :  { %v36_v4 = vpop.xlane.xlu0 %35 }
  0x8d   :  { %v41_v5 = vmul.f32 0.03125, %v36_v4 }
  0x8f   :  { %v471_v6 = vsub.f32 %v31_v0, %v41_v5 }
  0x90   :  { %v39_v7 = vpop.xlane.xlu0 %38 }
  0x91   :  { %v42_v8 = vmul.f32 0.03125, %v39_v7  ;;  %v45_v9 = vmul.f32 %v471_v6, %v471_v6 }
  0x93   :  { %v475_v10 = vsub.f32 %v32_v1, %v42_v8  ;;  %v47_v11 = vsel %vm33_vm0, %v45_v9, 0.0 }
  0x94   :  { %48 = vadd.xlane.f32.xlu1 %v47_v11 }
  0x95   :  { %v46_v12 = vmul.f32 %v475_v10, %v475_v10 }
  0x97   :  { %v50_v13 = vsel %vm33_vm0, %v46_v12, 0.0 }
  0x98   :  { %51 = vadd.xlane.f32.xlu1 %v50_v13 }
 0x11d   :  { %v49_v30 = vpop.xlane.xlu1 %48 }
 0x11e   :  { %v53_v31 = vmul.f32 0.03125, %v49_v30 }
 0x120   :  { %v55_v32 = vadd.f32 1e-05, %v53_v31 }
 0x121   :  { %v52_v33 = vpop.xlane.xlu1 %51 }
 0x122   :  { %393 = vrsqrt.f32 %v55_v32  ;;  %v54_v34 = vmul.f32 0.03125, %v52_v33 }
 0x124   :  { %v56_v35 = vadd.f32 1e-05, %v54_v34 }
 0x126   :  { %395 = vrsqrt.f32 %v56_v35 }
 0x12f   :  { %v394_v36 = vpop.eup %393 }
 0x130   :  { %v59_v38 = vmul.f32 %v394_v36, %v471_v6 }
 0x132   :  { %v68_v40 = vmul.f32 %v313_v37, %v59_v38 }
 0x133   :  { %v396_v41 = vpop.eup %395 }
 0x134   :  { %v77_v42 = vadd.f32 %v314_v39, %v68_v40  ;;  %v60_v43 = vmul.f32 %v396_v41, %v475_v10 }
 0x136   :  { %79 = vst.msk [vmem:[#allocation2] sm:$0xff] %vm33_vm0, %v77_v42  ;;  %v69_v44 = vmul.f32 %v313_v37, %v60_v43 }
 0x138   :  { %v78_v45 = vadd.f32 %v314_v39, %v69_v44 }
 0x13a   :  { %80 = vst.msk [vmem:[#allocation2 + $0x8] sm:$0xff] %vm33_vm0, %v78_v45 }
 0x13d   :  { %v103_v46 = vld [vmem:[#allocation2] sm:$0xff] }
 0x13e   :  { %351 = vmatprep.mubr.msk.f32.mxu0 %vm33_vm0, %v103_v46 }
 0x141   :  { %v104_v47 = vld [vmem:[#allocation2 + $0x8] sm:$0xff] }
 0x142   :  { %352 = vmatmul.mubr.msk.f32.vlgmr.msra.gmra.mxu0 %vm33_vm0, %v104_v47 }
 0x202   :  { %v353_v54 = vpop.f32.mrf.mxu0 }
 0x203   :  { %v191_v55 = vadd.f32 %v353_v54, %v315_v53 }
 0x204   :  { %v185_v56 = vpop.f32.mrf.mxu0 }
 0x205   :  { %v186_v57 = vadd.f32 %v315_v53, %v185_v56  ;;  %v195_v59 = vmax.f32 %v191_v55, 0.0 }
 0x207   :  { %v194_v58 = vmax.f32 %v186_v57, 0.0 }
 0x209   :  { %386 = vmatprep.mubr.f32.mxu1 %v194_v58 }
 0x20a   :  { %387 = vmatmul.mubr.f32.vlgmr.msra.gmra.mxu1 %v195_v59 }
 0x2ca   :  { %v388_v61 = vpop.f32.mrf.mxu1 }
 0x2cb   :  { %v274_v63 = vadd.f32 %v388_v61, %v197_v60 }
 0x2cc   :  { %v264_v0 = vpop.f32.mrf.mxu1 }
 0x2cd   :  { %276 = vst.msk [vmem:[#allocation3 + $0x8] sm:$0xff] %vm33_vm0, %v274_v63  ;;  %v273_v1 = vadd.f32 %v264_v0, %v196_v62 }
 0x2cf   :  { %275 = vst.msk [vmem:[#allocation3] sm:$0xff] %vm33_vm0, %v273_v1 }
 0x2d4   :  { %v281_v3 = vld [vmem:[#allocation3 + $0x8] sm:$0xff] }
 0x2d5   :  { %v290_v4 = vadd.f32 %v318_v2, %v281_v3 }
 0x2d6   :  { %v280_v5 = vld [vmem:[#allocation3] sm:$0xff] }
 0x2d7   :  { %v289_v6 = vadd.f32 %v318_v2, %v280_v5  ;;  %v294_v7 = vadd.f32 %v290_v4, %v104_v47 }
 0x2d9   :  { %v293_v8 = vadd.f32 %v289_v6, %v103_v46  ;;  %296 = vst.msk [vmem:[#allocation4 + $0x8] sm:$0xff] %vm33_vm0, %v294_v7 }
 0x2db   :  { %295 = vst.msk [vmem:[#allocation4] sm:$0xff] %vm33_vm0, %v293_v8 }
 0x2dc   :  { %408 = shalt.err (!%p405_p4)
}
 0x2dd   :  { %s421_s6 = smov 128   ;;  %s422_s25 = smov 8  }
 0x2de   :  { %308 = dma.vmem_to_hbm [thread:$0]  %s303_s23, 256, %s575_s7, [#allocation5], %s421_s6, %s421_s6, %s422_s25  }
 0x2df   :  { %417 = dma.done.wait [#allocation5], 256  }
 0x2e0   :  { %418 = vsyncadd [#allocation5], 4294967040 }
 0x2e1   :  { %312 = vsyncpa [#allocation5], 1 }

</bundles_post_ra>
